<compile_context>
chip_gen: v7x
topology: tpu7x:2x2x1
jax: 0.10.0
libtpu: 0.0.40
codegen_flags: <defaults>
</compile_context>

<pallas_src>
import jax
import jax.numpy as jnp
import numpy as np
from jax.experimental import pallas as pl
from jax.experimental.pallas import tpu as pltpu

_EPS = 1e-5
_LANE = 128
_MAX_HW_TILE = 512                 # ~512-wide lane tiles: good DMA/compute overlap
_VMEM_LIMIT = 32 * 1024 * 1024     # safe on v5e (16 MiB default) and v7x (64 MiB phys)


def _stats_kernel(x_ref, stat_ref):
    """Accumulate per-(n, c) [sum, sum_sq] over the HW tiles (P3 accumulator)."""
    t = pl.program_id(1)

    @pl.when(t == 0)
    def _():
        stat_ref[...] = jnp.zeros_like(stat_ref)

    x = x_ref[...].astype(jnp.float32)                    # (1, C, hw_tile)
    s = jnp.sum(x, axis=-1, keepdims=True)                # (1, C, 1)
    sq = jnp.sum(x * x, axis=-1, keepdims=True)           # (1, C, 1)
    stat_ref[...] += jnp.concatenate([s, sq], axis=-1)    # (1, C, 2)


def _apply_kernel(x_ref, scale_ref, shift_ref, o_ref):
    """y = x * scale + shift (one FMA per element, single full-block store)."""
    x = x_ref[...].astype(jnp.float32)
    y = x * scale_ref[...] + shift_ref[...]               # (1,C,1) lane-broadcast
    o_ref[...] = y.astype(o_ref.dtype)


def _pick_hw_tiling(hw):
    """Return (padded_hw, hw_tile); hw_tile is a multiple of 128, <= 512."""
    hw_pad = ((hw + _LANE - 1) // _LANE) * _LANE
    if hw_pad <= _MAX_HW_TILE:
        return hw_pad, hw_pad
    hw_pad = ((hw + _MAX_HW_TILE - 1) // _MAX_HW_TILE) * _MAX_HW_TILE
    return hw_pad, _MAX_HW_TILE


def ibn_forward(x_nchw, w_in, b_in, w_bn, b_bn, eps=_EPS):
    """x_nchw: [N, C, H, W]. Returns [N, C, H, W] (IBN forward, train mode)."""
    N, C, H, W = x_nchw.shape
    half1 = C // 2
    half2 = C - half1
    HW = H * W
    HW_pad, hw_tile = _pick_hw_tiling(HW)
    T = HW_pad // hw_tile

    x3 = x_nchw.reshape(N, C, HW)
    if HW_pad != HW:
        # Zero padding contributes 0 to sum / sum_sq; we normalize by the true HW.
        x3 = jnp.pad(x3, ((0, 0), (0, 0), (0, HW_pad - HW)))

    # ---------- Pass 1: per-(n, c) sum / sum_sq, accumulated over HW tiles ----------
    stats = pl.pallas_call(
        _stats_kernel,
        out_shape=jax.ShapeDtypeStruct((N, C, 2), jnp.float32),
        grid=(N, T),
        in_specs=[pl.BlockSpec((1, C, hw_tile), lambda n, t: (n, 0, t))],
        out_specs=pl.BlockSpec((1, C, 2), lambda n, t: (n, 0, 0)),
        compiler_params=pltpu.CompilerParams(
            dimension_semantics=("parallel", "arbitrary"),
            vmem_limit_bytes=_VMEM_LIMIT),
    )(x3)

    sum_x = stats[..., 0]                                   # (N, C)
    sum_sq = stats[..., 1]                                  # (N, C)

    # ---------- Finalize stats -> per-(n, c) scale / shift (tiny, plain JAX) ----------
    # Instance-norm half: per-(n, c) stats over HW (biased variance).
    mu1 = sum_x[:, :half1] / HW
    var1 = jnp.maximum(sum_sq[:, :half1] / HW - mu1 * mu1, 0.0)
    scale1 = w_in[None, :] * jax.lax.rsqrt(var1 + eps)      # (N, half1)
    shift1 = b_in[None, :] - mu1 * scale1

    # Batch-norm half: per-channel training-mode batch stats over (N, HW).
    cnt = N * HW
    mu2 = jnp.sum(sum_x[:, half1:], axis=0) / cnt           # (half2,)
    var2 = jnp.maximum(jnp.sum(sum_sq[:, half1:], axis=0) / cnt - mu2 * mu2, 0.0)
    scale2 = w_bn * jax.lax.rsqrt(var2 + eps)               # (half2,)
    shift2 = b_bn - mu2 * scale2
    scale2 = jnp.broadcast_to(scale2[None, :], (N, half2))
    shift2 = jnp.broadcast_to(shift2[None, :], (N, half2))

    scale = jnp.concatenate([scale1, scale2], axis=1).reshape(N, C, 1).astype(jnp.float32)
    shift = jnp.concatenate([shift1, shift2], axis=1).reshape(N, C, 1).astype(jnp.float32)

    # ---------- Pass 2: y = x * scale + shift over pipelined (1, C, hw_tile) blocks ----------
    out3 = pl.pallas_call(
        _apply_kernel,
        out_shape=jax.ShapeDtypeStruct((N, C, HW_pad), x_nchw.dtype),
        grid=(N, T),
        in_specs=[
            pl.BlockSpec((1, C, hw_tile), lambda n, t: (n, 0, t)),
            pl.BlockSpec((1, C, 1), lambda n, t: (n, 0, 0)),
            pl.BlockSpec((1, C, 1), lambda n, t: (n, 0, 0)),
        ],
        out_specs=pl.BlockSpec((1, C, hw_tile), lambda n, t: (n, 0, t)),
        compiler_params=pltpu.CompilerParams(
            dimension_semantics=("parallel", "parallel"),
            vmem_limit_bytes=_VMEM_LIMIT),
    )(x3, scale, shift)

    if HW_pad != HW:
        out3 = out3[:, :, :HW]
    return out3.reshape(N, C, H, W)


def _ibn_reference(x, w_in, b_in, w_bn, b_bn, eps=_EPS):
    """Pure-JAX reference mirroring the PyTorch IBN forward (train mode)."""
    N, C, H, W = x.shape
    half = C // 2
    x1, x2 = x[:, :half], x[:, half:]
    mu1 = x1.mean(axis=(2, 3), keepdims=True)
    v1 = x1.var(axis=(2, 3), keepdims=True)
    y1 = (x1 - mu1) / jnp.sqrt(v1 + eps)
    y1 = y1 * w_in[None, :, None, None] + b_in[None, :, None, None]
    mu2 = x2.mean(axis=(0, 2, 3), keepdims=True)
    v2 = x2.var(axis=(0, 2, 3), keepdims=True)
    y2 = (x2 - mu2) / jnp.sqrt(v2 + eps)
    y2 = y2 * w_bn[None, :, None, None] + b_bn[None, :, None, None]
    return jnp.concatenate([y1, y2], axis=1)


if __name__ == "__main__":
    # IBN(planes=4, bn_norm='BN', num_splits=1); input N=2, C=4, H=W=16
    N, C, H, W = 2, 4, 16, 16
    half1 = C // 2
    half2 = C - half1

    key = jax.random.PRNGKey(0)
    x = jax.random.normal(key, (N, C, H, W), dtype=jnp.float32)

    # Parameter init matching the module's __init__:
    #   InstanceNorm2d(affine=True): weight=1, bias=0
    #   BatchNorm:                   weight_init=1.0, bias_init=0.0
    w_in = jnp.ones((half1,), dtype=jnp.float32)
    b_in = jnp.zeros((half1,), dtype=jnp.float32)
    w_bn = jnp.ones((half2,), dtype=jnp.float32)
    b_bn = jnp.zeros((half2,), dtype=jnp.float32)

    out = ibn_forward(x, w_in, b_in, w_bn, b_bn)
    out = jax.block_until_ready(out)

    ref = jax.block_until_ready(_ibn_reference(x, w_in, b_in, w_bn, b_bn))
    np.testing.assert_allclose(np.asarray(out), np.asarray(ref),
                               rtol=1e-5, atol=1e-5)
    print("KERNEL_OK")
</pallas_src>

<mosaic_0001>
module attributes {stable_mosaic.version = 11 : i64} {
  func.func @_stats_kernel(%arg0: i32, %arg1: i32, %arg2: memref<1x4x256xf32, #tpu.memory_space<vmem>>, %arg3: memref<1x4x2xf32, #tpu.memory_space<vmem>>) attributes {dimension_semantics = [#tpu.dimension_semantics<parallel>, #tpu.dimension_semantics<arbitrary>], iteration_bounds = array<i64: 2, 1>, scalar_prefetch = 0 : i64, scratch_operands = 0 : i64, tpu.core_type = #tpu.core_type<tc>, window_params = [{transform_indices = @transform_0, window_bounds = array<i64: 1, 4, 256>}, {transform_indices = @transform_1, window_bounds = array<i64: 1, 4, 2>}]} {
    %c0_i32 = arith.constant 0 : i32
    %0 = arith.cmpi eq, %arg1, %c0_i32 : i32
    %1 = arith.extui %0 : i1 to i32
    %c0_i32_0 = arith.constant 0 : i32
    %2 = arith.cmpi ne, %1, %c0_i32_0 : i32
    scf.if %2 {
      %cst_10 = arith.constant 0.000000e+00 : f32
      %13 = vector.broadcast %cst_10 : f32 to vector<1x4x2xf32>
      %c0_11 = arith.constant 0 : index
      %c0_12 = arith.constant 0 : index
      %c0_13 = arith.constant 0 : index
      %14 = vector.load %arg3[%c0_11, %c0_12, %c0_13] : memref<1x4x2xf32, #tpu.memory_space<vmem>>, vector<1x4x2xf32>
      tpu.vector_store %arg3[%c0_11, %c0_12, %c0_13], %13 {strides = array<i32>} : memref<1x4x2xf32, #tpu.memory_space<vmem>>, vector<1x4x2xf32>,
    } else {
    }
    %c0 = arith.constant 0 : index
    %c0_1 = arith.constant 0 : index
    %c0_2 = arith.constant 0 : index
    %3 = vector.load %arg2[%c0, %c0_1, %c0_2] : memref<1x4x256xf32, #tpu.memory_space<vmem>>, vector<1x4x256xf32>
    %cst = arith.constant dense<0.000000e+00> : vector<1x4xf32>
    %4 = vector.multi_reduction <add>, %3, %cst [2] : vector<1x4x256xf32> to vector<1x4xf32>
    %5 = vector.shape_cast %4 : vector<1x4xf32> to vector<1x4x1xf32>
    %6 = arith.mulf %3, %3 : vector<1x4x256xf32>
    %cst_3 = arith.constant dense<0.000000e+00> : vector<1x4xf32>
    %7 = vector.multi_reduction <add>, %6, %cst_3 [2] : vector<1x4x256xf32> to vector<1x4xf32>
    %8 = vector.shape_cast %7 : vector<1x4xf32> to vector<1x4x1xf32>
    %c0_4 = arith.constant 0 : index
    %c0_5 = arith.constant 0 : index
    %c0_6 = arith.constant 0 : index
    %9 = vector.load %arg3[%c0_4, %c0_5, %c0_6] : memref<1x4x2xf32, #tpu.memory_space<vmem>>, vector<1x4x2xf32>
    %10 = tpu.concatenate %5, %8 in 2 : vector<1x4x1xf32>, vector<1x4x1xf32> -> vector<1x4x2xf32>
    %11 = arith.addf %9, %10 : vector<1x4x2xf32>
    %c0_7 = arith.constant 0 : index
    %c0_8 = arith.constant 0 : index
    %c0_9 = arith.constant 0 : index
    %12 = vector.load %arg3[%c0_7, %c0_8, %c0_9] : memref<1x4x2xf32, #tpu.memory_space<vmem>>, vector<1x4x2xf32>
    tpu.vector_store %arg3[%c0_7, %c0_8, %c0_9], %11 {strides = array<i32>} : memref<1x4x2xf32, #tpu.memory_space<vmem>>, vector<1x4x2xf32>,
    return
  }
  func.func @transform_0(%arg0: i32, %arg1: i32) -> (i32, i32, i32) {
    %c0_i32 = arith.constant 0 : i32
    %c0_i32_0 = arith.constant 0 : i32
    return %arg0, %c0_i32, %arg1 : i32, i32, i32
  }
  func.func @transform_1(%arg0: i32, %arg1: i32) -> (i32, i32, i32) {
    %c0_i32 = arith.constant 0 : i32
    %c0_i32_0 = arith.constant 0 : i32
    %c0_i32_1 = arith.constant 0 : i32
    return %arg0, %c0_i32, %c0_i32_0 : i32, i32, i32
  }
}

</mosaic_0001>

<bundles_post_ra>
// kernel: tpu_custom_call.1
= control target key start
LH: loop header
LB: loop body
LE: loop exit
PB: predicated region body
PF: predicated region fallthrough
CT: control target
= control target key end

     0   :  { %6 = vsyncpa [#allocation3], 0  ;;  %s548_s0 = inlined_call_operand.hbm [shape: f32[2,4,256], index: 0, kind: input, shape index: {}]   ;;  %s549_s1 = inlined_call_operand.vmem [shape: f32[2,4,2], index: 1, kind: output, shape index: {}]  }
   0x1   :  { %8 = vsyncpa [#allocation3 + $0x1], 0  ;;  %s421_s6 = smov 0   ;;  %s423_s7 = smov 0  }
   0x2   :  { %s425_s8 = smov 0   ;;  %s427_s9 = smov 0  }
   0x3   :  { %s429_s10 = smov 0   ;;  %s431_s11 = smov 0  }
   0x4 LB: > { %s257_s12 = sadd.s32 4294967295, %s407_s11   ;;  %s26_s13 = sadd.s32 1, %s403_s10  ;;  %s407_s11 = sphi %s431_s11, %s14_s11   ;;  %s403_s10 = sphi %s429_s10, %s559_s10   ;;  %s399_s9 = sphi %s427_s9, %s558_s9   ;;  %s395_s8 = sphi %s425_s8, %s557_s8   ;;  %s391_s7 = sphi %s423_s7, %s556_s7   ;;  %s387_s6 = sphi %s421_s6, %s555_s6  }
   0x5   : > { %p28_p0 = scmp.ge.s32.totalorder %s26_s13, 2  ;;  %s35_s14 = sadd.s32 1, %s395_s8 }
   0x6   : > { %p42_p1 = scmp.ne.s32.totalorder %s395_s8, %s391_s7  ;;  %p43_p2 = scmp.eq.s32.totalorder %s407_s11, 0 }
   0x7   : > { %s561_s13 = smov (%p28_p0, %s26_s13), 0  ;;  %p48_p4 = scmp.ne.s32.totalorder %s391_s7, %s387_s6 }
   0x8   : > { %p457_p3 = por %p43_p2, %p42_p1  ;;  %s30_s16 = ssub.s32 %s403_s10, %s561_s13 }
   0x9   : > { %p49_p5 = scmp.eq.s32.totalorder %s257_s12, 0  ;;  %p33_p6 = scmp.eq.s32.totalorder %s30_s16, 0 }
   0xa   : > { %p276_p8 = scmp.lt.s32.totalorder %s407_s11, 2  ;;  %s98_s19 = sand.u32 1, %s395_s8  }
   0xb   : > { %p464_p7 = por %p49_p5, %p48_p4  ;;  %s269_s20 = sshll.u32 %s403_s10, 7 }
   0xc   : > { %s470_s18 = scalar_select %p33_p6, %s395_s8, %s35_s14  }
   0xd   : > { %s261_s21 = sshll.u32 %s98_s19, 3  ;;  %s477_s24 = scalar_lea.hbm %s548_s0, %s269_s20 }
   0xe   : > { %s102_s25 = scalar_lea.vmem [#allocation2], %s261_s21  ;;  %p481_p9 = pnand %p276_p8, %p457_p3 }
   0xf   : > { %s112_s26 = sshll.u32 %s102_s25, 4  ;;  %s99_s28 = scalar_lea.sflag [#allocation3], %s98_s19  ;;  %s485_s26 = int_to_ptr.vmem [resolvable:$true] %s112_s26 }
  0x10   : > { %s327_s29 = scalar_lea.hbm %s477_s24, 128  ;;  %p329_p13 = pneg %p481_p9 }
  0x11   : > { %p328_p12 = scmp.ne.s32.totalorder %s477_s24, %s327_s29  ;;  %s332_s3 = scalar_lea.hbm %s548_s0, 256 }
  0x12   : > { %p333_p2 = scmp.lt.u32.totalorder %s477_s24, %s548_s0  ;;  %p334_p3 = scmp.lt.u32.totalorder %s332_s3, %s327_s29 }
  0x13   : > { %p330_p0 = pnand %p329_p13, %p328_p12  ;;  %p336_p5 = scmp.lt.u32.totalorder %s327_s29, %s477_s24 }
  0x14   : > { %p335_p4 = por %p334_p3, %p333_p2 }
  0x15   : > { %p331_p1 = pneg %p330_p0 }
  0x16   : > { %p337_p6 = por %p336_p5, %p335_p4 }
  0x18   : > { %p338_p8 = pnand %p337_p6, %p331_p1 }
  0x1a   : > { %341 = shalt.err (!%p338_p8)
}
  0x1b   : > { %s342_s6 = scalar_lea.vmem %s485_s26, 128  ;;  %s409_s12 = smov [#allocation2]  }
  0x1c   : > { %p343_p12 = scmp.ne.s32.totalorder %s485_s26, %s342_s6  ;;  %s347_s14 = sshll.u32 %s409_s12, 4  ;;  %s348_s14 = int_to_ptr.vmem [resolvable:$false] %s347_s14 }
  0x1d   : > { %s349_s15 = scalar_lea.vmem %s348_s14, 256  ;;  %p350_p11 = scmp.lt.s32.totalorder %s485_s26, %s348_s14 }
  0x1e   : > { %p345_p0 = pnand %p343_p12, %p329_p13  ;;  %p351_p2 = scmp.lt.s32.totalorder %s349_s15, %s342_s6 }
  0x20   : > { %p346_p10 = pneg %p345_p0  ;;  %p352_p3 = por %p351_p2, %p350_p11 }
  0x22   : > { %p353_p4 = pnand %p352_p3, %p346_p10 }
  0x24   : > { %356 = shalt.err (!%p353_p4)
}
  0x25   : > { %275 = dma.hbm_to_vmem [thread:$0]  (!%p481_p9), %s477_s24, 128, %s485_s26, %s99_s28  }
  0x26   : > { %p553_p1 = scmp.lt.s32.totalorder %s407_s11, 3  ;;  %p554_p5 = scmp.ge.s32.totalorder %s407_s11, 1 }
  0x28   : > { %p118_p13 = pnand %p554_p5, %p553_p1 }
  0x29   : > { %s123_s16 = sand.u32 (!%p118_p13), 1, %s391_s7  }
  0x2a   : > { %121 = sbr.rel (%p118_p13) target bundleno = 206 (0xce), region = 24  ;;  %s265_s19 = sshll.u32 (!%p118_p13), %s123_s16, 3 }
  0x2b   : > { %s124_s20 = scalar_lea.sflag (!%p118_p13), [#allocation3], %s123_s16  ;;  %s127_s21 = scalar_lea.vmem (!%p118_p13), [#allocation2], %s265_s19 }
  0x31   : > { %382 = dma.done.wait (%p464_p7), %s124_s20, 128  }
  0x32   : > { %384 = vsyncadd (%p464_p7), %s124_s20, 4294967168  ;;  %p146_p10 = scmp.lt.s32.totalorder %s399_s9, 1  ;;  %vm154_vm0 = vcmask 11264   ;;  %vm160_vm1 = vcmask 1043456   ;;  %v410_v0 = vmov 0.0   ;;  %v156_v1 = vld [vmem:[%s127_s21] sm:$0xff] }
  0x33   : > { %v158_v2 = vcombine.high %v156_v1, %v156_v1  ;;  %v161_v3 = vsel %vm160_vm1, %v156_v1, 0.0  ;;  %v166_v4 = vmul.f32 %v156_v1, %v156_v1  ;;  %vm176_vm2 = vcmask 7168  }
  0x34   : > { %s563_s9 = smov (!%p146_p10, %s399_s9), 1 }
  0x35   : > { %s266_s22 = sshll.u32 %s563_s9, 2  ;;  %v162_v5 = vsel %vm160_vm1, %v158_v2, 0.0  ;;  %v168_v6 = vcombine.high %v166_v4, %v166_v4  ;;  %v170_v7 = vsel %vm160_vm1, %v166_v4, 0.0 }
  0x36   : > { %s149_s25 = scalar_lea.vmem %s549_s1, %s266_s22  ;;  %v163_v8 = vadd.f32 %v162_v5, %v161_v3 }
  0x37   : > { %155 = vst.msk [vmem:[%s149_s25] sm:$0xf] %vm154_vm0, %v410_v0  ;;  %v171_v9 = vsel %vm160_vm1, %v168_v6, 0.0 }
  0x38   : > { %164 = vadd.xlane.f32.xlu0 %v163_v8  ;;  %v172_v10 = vadd.f32 %v171_v9, %v170_v7 }
  0x3c   : > { %173 = vadd.xlane.f32.xlu0 %v172_v10 }
  0x3e   : > { %v175_v12 = vld [vmem:[%s149_s25] sm:$0xf] }
  0xc5   : > { %v165_v11 = vpop.xlane.xlu0 %164 }
  0xc9   : > { %v174_v13 = vpop.xlane.xlu0 %173 }
  0xca   : > { %v177_v14 = vsel %vm176_vm2, %v165_v11, %v174_v13 }
  0xcb   : > { %v178_v15 = vadd.f32 %v177_v14, %v175_v12 }
  0xcd   : > { %180 = vst.msk [vmem:[%s149_s25] sm:$0xf] %vm154_vm0, %v178_v15 }
  0xce PF: > { %s14_s11 = sadd.s32 1, %s407_s11   ;;  %s555_s6 = smov %s391_s7 }
  0xcf   : > { %p11_p7 = scmp.ge.s32.totalorder %s14_s11, 4   ;;  %s556_s7 = smov %s395_s8 }
  0xd0   : > { %s557_s8 = smov %s470_s18  ;;  %s558_s9 = smov %s403_s10 }
  0xd1   : > { %s559_s10 = smov %s561_s13  ;;  %13 = sbr.rel (!%p11_p7) target bundleno = 4 (0x4), region = 68 }
  0xd8   :  { %200 = vsyncpa [#allocation3], 1 }
  0xd9   :  { %202 = vsyncpa [#allocation3 + $0x1], 1 }

</bundles_post_ra>
